<compile_context>
chip_gen: v6e
topology: v6e:2x2x1
jax: 0.10.0
libtpu: 0.0.40
codegen_flags: <defaults>
</compile_context>

<pallas_src>
import jax
import jax.numpy as jnp
from jax.experimental import pallas as pl
from jax.experimental.pallas import tpu as pltpu

_VMEM_LIMIT = 32 * 1024 * 1024  # explicit scoped-VMEM budget; <= physical on all gens


# ----------------------------- helpers ---------------------------------------
def _round_up(x, m):
    return (x + m - 1) // m * m


def _pad_to(a, shape):
    pads = [(0, t - s) for s, t in zip(a.shape, shape)]
    if any(p[1] for p in pads):
        a = jnp.pad(a, pads)
    return a


def _sublane(dtype):
    return 16 if jnp.dtype(dtype).itemsize == 2 else 8


def _tile_and_pad(size, cap, align):
    """Tile (multiple of `align`, <= cap) and padded size, balanced blocks."""
    s = _round_up(size, align)
    if s <= cap:
        return s, s
    nblk = -(-s // cap)
    t = _round_up(-(-s // nblk), align)
    return t, t * nblk


def _pick_k_tile(K, cap=1024):
    """Reduction tile: 256-aligned when possible; prefer exact divisors of the
    lane-aligned K so x never gets padded/copied along K in HBM."""
    align = 256 if (K % 256 == 0 and K >= 256) else 128
    s = _round_up(K, align)
    if s <= cap:
        return s, s
    t = cap - (cap % align)
    while t >= max(align, cap // 4):
        if s % t == 0:
            return t, s
        t -= align
    nblk = -(-s // cap)
    t = _round_up(-(-s // nblk), align)
    return t, t * nblk


# ----------------------- shared head: y = flatten(x) @ W + b -----------------
def _linear_kernel(x_ref, w_ref, b_ref, o_ref, acc_ref):
    # x_ref: [tm, tk], w_ref: [tk, tn], b_ref: [1, tn], o_ref: [tm, tn]
    k = pl.program_id(2)

    @pl.when(k == 0)
    def _():
        acc_ref[...] = jnp.zeros_like(acc_ref)

    acc_ref[...] += jnp.dot(x_ref[...], w_ref[...],
                            preferred_element_type=jnp.float32)

    @pl.when(k == pl.num_programs(2) - 1)
    def _():
        o_ref[...] = (acc_ref[...] + b_ref[...].astype(jnp.float32)
                      ).astype(o_ref.dtype)


def flatten_head_shared(x, w, b, *, compute_dtype=jnp.bfloat16):
    bsz, n_vars, d_model, patch_num = x.shape
    nf = d_model * patch_num
    tw = w.shape[1]
    M = bsz * n_vars
    out_dtype = x.dtype

    x2 = x.reshape(M, nf)
    if compute_dtype is not None:
        x2 = x2.astype(compute_dtype)
        w = w.astype(compute_dtype)
    sub = _sublane(x2.dtype)

    tm, Mp = _tile_and_pad(M, 512, sub)
    tk, Kp = _pick_k_tile(nf, 1024)
    tn, Np = _tile_and_pad(tw, 256, 128)

    x2 = _pad_to(x2, (Mp, Kp))
    wp = _pad_to(w, (Kp, Np))
    bp = _pad_to(b.reshape(1, tw).astype(jnp.float32), (1, Np))

    itemsize = x2.dtype.itemsize
    out = pl.pallas_call(
        _linear_kernel,
        out_shape=jax.ShapeDtypeStruct((Mp, Np), out_dtype),
        grid_spec=pltpu.PrefetchScalarGridSpec(
            num_scalar_prefetch=0,
            grid=(Mp // tm, Np // tn, Kp // tk),
            in_specs=[
                pl.BlockSpec((tm, tk), lambda i, j, k: (i, k)),
                pl.BlockSpec((tk, tn), lambda i, j, k: (k, j)),
                pl.BlockSpec((1, tn), lambda i, j, k: (0, j)),
            ],
            out_specs=pl.BlockSpec((tm, tn), lambda i, j, k: (i, j)),
            scratch_shapes=[pltpu.VMEM((tm, tn), jnp.float32)],
        ),
        compiler_params=pltpu.CompilerParams(
            dimension_semantics=("parallel", "parallel", "arbitrary"),
            vmem_limit_bytes=_VMEM_LIMIT),
        cost_estimate=pl.CostEstimate(
            flops=2 * Mp * Kp * Np,
            transcendentals=0,
            bytes_accessed=(Mp * Kp + Kp * Np + Np + Mp * Np) * itemsize),
    )(x2, wp, bp)
    return out[:M, :tw].reshape(bsz, n_vars, tw)


# ----------------------- 'i': one Linear per variable ------------------------
def _indiv_kernel(x_ref, w_ref, b_ref, o_ref, acc_ref):
    # x_ref: [tb, vb, tk], w_ref: [vb, tk, tn], b_ref: [vb, 1, tn]
    # o_ref / acc_ref: [vb, tb, tn]  (vars-major, matches dot_general output,
    # no in-kernel transpose; wrapper does the cheap output transpose)
    k = pl.program_id(3)

    @pl.when(k == 0)
    def _():
        acc_ref[...] = jnp.zeros_like(acc_ref)

    acc_ref[...] += jax.lax.dot_general(
        x_ref[...], w_ref[...],
        dimension_numbers=(((2,), (1,)), ((1,), (0,))),
        preferred_element_type=jnp.float32)

    @pl.when(k == pl.num_programs(3) - 1)
    def _():
        o_ref[...] = (acc_ref[...] + b_ref[...].astype(jnp.float32)
                      ).astype(o_ref.dtype)


def flatten_head_individual(x, w_all, b_all, *, compute_dtype=jnp.bfloat16):
    # w_all: [n_vars, nf, tw], b_all: [n_vars, 1, tw]
    bsz, n_vars, d_model, patch_num = x.shape
    nf = d_model * patch_num
    tw = w_all.shape[-1]
    out_dtype = x.dtype

    x3 = x.reshape(bsz, n_vars, nf)            # no HBM transpose of x
    if compute_dtype is not None:
        x3 = x3.astype(compute_dtype)
        w_all = w_all.astype(compute_dtype)
    sub = _sublane(x3.dtype)

    # vars per grid step: block dim must be a multiple of 8 or the full extent.
    if n_vars <= 8:
        vb, Vp = n_vars, n_vars
    else:
        vb, Vp = 8, _round_up(n_vars, 8)
    tb, Bp = _tile_and_pad(bsz, 128, sub)      # batch tile (extra parallel axis)
    tk, Kp = _pick_k_tile(nf, 512)             # weight-stream tile
    tn, Np = _tile_and_pad(tw, 256, 128)

    x3 = _pad_to(x3, (Bp, Vp, Kp))
    wp = _pad_to(w_all, (Vp, Kp, Np))
    bp = _pad_to(b_all.astype(jnp.float32), (Vp, 1, Np))

    itemsize = x3.dtype.itemsize
    out = pl.pallas_call(
        _indiv_kernel,
        out_shape=jax.ShapeDtypeStruct((Vp, Bp, Np), out_dtype),
        grid_spec=pltpu.PrefetchScalarGridSpec(
            num_scalar_prefetch=0,
            grid=(Vp // vb, Bp // tb, Np // tn, Kp // tk),
            in_specs=[
                pl.BlockSpec((tb, vb, tk), lambda v, m, n, k: (m, v, k)),
                pl.BlockSpec((vb, tk, tn), lambda v, m, n, k: (v, k, n)),
                pl.BlockSpec((vb, 1, tn), lambda v, m, n, k: (v, 0, n)),
            ],
            out_specs=pl.BlockSpec((vb, tb, tn), lambda v, m, n, k: (v, m, n)),
            scratch_shapes=[pltpu.VMEM((vb, tb, tn), jnp.float32)],
        ),
        compiler_params=pltpu.CompilerParams(
            dimension_semantics=("parallel", "parallel", "parallel",
                                 "arbitrary"),
            vmem_limit_bytes=_VMEM_LIMIT),
        cost_estimate=pl.CostEstimate(
            flops=2 * Bp * Vp * Kp * Np,
            transcendentals=0,
            bytes_accessed=(Bp * Vp * Kp + Vp * Kp * Np + Vp * Np
                            + Vp * Bp * Np) * itemsize),
    )(x3, wp, bp)
    # (Vp, Bp, Np) -> slice small output -> (bsz, n_vars, tw) in the wrapper.
    return jnp.transpose(out[:n_vars, :bsz, :tw], (1, 0, 2))


# ----------------------- 'c': Cluster_wise_linear ----------------------------
def _cluster_kernel(x_ref, w_ref, b_ref, p_ref, o_ref, acc_ref):
    # grid = (i, n, k, c) with c innermost: the x tile index (i, k) is constant
    # over the inner cluster loop, so x is DMA'd from HBM only once per (i,n,k).
    # x_ref: [tm, tk], w_ref: [1, tk, tn], b_ref: [1, 1, tn], p_ref: [1, tm, 1]
    k = pl.program_id(2)
    c = pl.program_id(3)

    @pl.when(jnp.logical_and(k == 0, c == 0))
    def _():
        acc_ref[...] = jnp.zeros_like(acc_ref)

    p = p_ref[0].astype(jnp.float32)                       # (tm, 1)

    @pl.when(k == 0)
    def _():
        acc_ref[...] += p * b_ref[0].astype(jnp.float32)   # once per (i, n, c)

    acc_ref[...] += p * jnp.dot(x_ref[...], w_ref[0],
                                preferred_element_type=jnp.float32)

    @pl.when(jnp.logical_and(k == pl.num_programs(2) - 1,
                             c == pl.num_programs(3) - 1))
    def _():
        o_ref[...] = acc_ref[...].astype(o_ref.dtype)


def flatten_head_cluster(x, w_all, b_all, prob, *, compute_dtype=jnp.bfloat16):
    # w_all: [n_cluster, nf, tw], b_all: [n_cluster, 1, tw], prob: [n_vars, n_cluster]
    bsz, n_vars, d_model, patch_num = x.shape
    nf = d_model * patch_num
    n_cluster, _, tw = w_all.shape
    M = bsz * n_vars
    out_dtype = x.dtype

    x2 = x.reshape(M, nf)
    if compute_dtype is not None:
        x2 = x2.astype(compute_dtype)
        w_all = w_all.astype(compute_dtype)
    sub = _sublane(x2.dtype)

    tm, Mp = _tile_and_pad(M, 512, sub)
    tk, Kp = _pick_k_tile(nf, 1024)
    tn, Np = _tile_and_pad(tw, 256, 128)

    x2 = _pad_to(x2, (Mp, Kp))
    wp = _pad_to(w_all, (n_cluster, Kp, Np))
    bp = _pad_to(b_all.astype(jnp.float32), (n_cluster, 1, Np))

    # per-row probability [n_cluster, Mp, 1]; flattened row index = b*n_vars+v.
    prob_rows = jnp.broadcast_to(prob.T[:, None, :],
                                 (n_cluster, bsz, n_vars)).reshape(n_cluster, M)
    prob_rows = _pad_to(prob_rows.astype(jnp.float32), (n_cluster, Mp))[..., None]

    itemsize = x2.dtype.itemsize
    out = pl.pallas_call(
        _cluster_kernel,
        out_shape=jax.ShapeDtypeStruct((Mp, Np), out_dtype),
        grid_spec=pltpu.PrefetchScalarGridSpec(
            num_scalar_prefetch=0,
            grid=(Mp // tm, Np // tn, Kp // tk, n_cluster),
            in_specs=[
                pl.BlockSpec((tm, tk), lambda i, n, k, c: (i, k)),
                pl.BlockSpec((1, tk, tn), lambda i, n, k, c: (c, k, n)),
                pl.BlockSpec((1, 1, tn), lambda i, n, k, c: (c, 0, n)),
                pl.BlockSpec((1, tm, 1), lambda i, n, k, c: (c, i, 0)),
            ],
            out_specs=pl.BlockSpec((tm, tn), lambda i, n, k, c: (i, n)),
            scratch_shapes=[pltpu.VMEM((tm, tn), jnp.float32)],
        ),
        compiler_params=pltpu.CompilerParams(
            dimension_semantics=("parallel", "parallel", "arbitrary",
                                 "arbitrary"),
            vmem_limit_bytes=_VMEM_LIMIT),
        cost_estimate=pl.CostEstimate(
            flops=2 * Mp * Kp * Np * n_cluster,
            transcendentals=0,
            bytes_accessed=((Np // tn) * Mp * Kp
                            + (Mp // tm) * n_cluster * Kp * Np
                            + n_cluster * Np + Mp * Np) * itemsize),
    )(x2, wp, bp, prob_rows)
    return out[:M, :tw].reshape(bsz, n_vars, tw)


# ----------------------- pure-JAX references ---------------------------------
def _ref_shared(x, w, b):
    bsz, n_vars = x.shape[:2]
    xf = x.reshape(bsz, n_vars, -1)
    return jnp.einsum("bvn,nt->bvt", xf, w) + b[None, None, :]


def _ref_individual(x, w_all, b_all):
    bsz, n_vars = x.shape[:2]
    xf = x.reshape(bsz, n_vars, -1)
    return jnp.einsum("bvn,vnt->bvt", xf, w_all) + b_all[:, 0, :][None]


def _ref_cluster(x, w_all, b_all, prob):
    bsz, n_vars = x.shape[:2]
    xf = x.reshape(bsz, n_vars, -1)
    y = jnp.einsum("bvn,knt->bvtk", xf, w_all) + jnp.transpose(
        b_all[:, 0, :], (1, 0))[None, None, :, :]
    return jnp.einsum("bvtk,vk->bvt", y, prob)


def _check(name, got, want, atol, rtol=0.0):
    assert got.shape == want.shape, (name, got.shape, want.shape)
    assert jnp.allclose(got, want, atol=atol, rtol=rtol), (
        name, float(jnp.max(jnp.abs(got - want))))


def _run_case(key, bsz, n_vars, d_model, patch_num, target_window, n_cluster,
              check_f32):
    nf = d_model * patch_num
    kx, kp, kw1, kb1, kw2, kb2, kw3, kb3 = jax.random.split(key, 8)

    x = jax.random.normal(kx, (bsz, n_vars, d_model, patch_num), jnp.float32)
    prob = jax.nn.softmax(
        jax.random.normal(kp, (n_vars, n_cluster), jnp.float32), axis=-1)

    bound = 1.0 / (nf ** 0.5)  # nn.Linear default init range, deterministic here
    w_shared = jax.random.uniform(kw1, (nf, target_window), jnp.float32, -bound, bound)
    b_shared = jax.random.uniform(kb1, (target_window,), jnp.float32, -bound, bound)
    w_indiv = jax.random.uniform(
        kw2, (n_vars, nf, target_window), jnp.float32, -bound, bound)
    b_indiv = jax.random.uniform(
        kb2, (n_vars, 1, target_window), jnp.float32, -bound, bound)
    w_clus = jax.random.uniform(
        kw3, (n_cluster, nf, target_window), jnp.float32, -bound, bound)
    b_clus = jax.random.uniform(
        kb3, (n_cluster, 1, target_window), jnp.float32, -bound, bound)

    # default path (bf16 inputs, f32 accumulation / output)
    y = jax.block_until_ready(flatten_head_shared(x, w_shared, b_shared))
    _check("shared_bf16", y, _ref_shared(x, w_shared, b_shared), atol=1e-1, rtol=1e-2)

    y = jax.block_until_ready(flatten_head_individual(x, w_indiv, b_indiv))
    _check("indiv_bf16", y, _ref_individual(x, w_indiv, b_indiv), atol=1e-1, rtol=1e-2)

    y = jax.block_until_ready(flatten_head_cluster(x, w_clus, b_clus, prob))
    _check("cluster_bf16", y, _ref_cluster(x, w_clus, b_clus, prob), atol=1e-1, rtol=1e-2)

    if check_f32:  # exact f32 path
        y = jax.block_until_ready(
            flatten_head_shared(x, w_shared, b_shared, compute_dtype=jnp.float32))
        _check("shared_f32", y, _ref_shared(x, w_shared, b_shared), atol=1e-4)

        y = jax.block_until_ready(
            flatten_head_individual(x, w_indiv, b_indiv, compute_dtype=jnp.float32))
        _check("indiv_f32", y, _ref_individual(x, w_indiv, b_indiv), atol=1e-4)

        y = jax.block_until_ready(
            flatten_head_cluster(x, w_clus, b_clus, prob, compute_dtype=jnp.float32))
        _check("cluster_f32", y, _ref_cluster(x, w_clus, b_clus, prob), atol=1e-4)


# ----------------------- main -------------------------------------------------
if __name__ == "__main__":
    key = jax.random.PRNGKey(0)
    k1, k2 = jax.random.split(key)

    # small single-tile case (bsz=2, n_vars=4, d_model=16, patch_num=8, tw=32)
    _run_case(k1, bsz=2, n_vars=4, d_model=16, patch_num=8,
              target_window=32, n_cluster=3, check_f32=True)

    # case that exercises multi-block K / multi-cluster / odd-shape padding
    # (nf = 1152 -> 3 K-tiles of 384, tw = 160 -> padded to 256 lanes)
    _run_case(k2, bsz=3, n_vars=5, d_model=24, patch_num=48,
              target_window=160, n_cluster=2, check_f32=False)

    print("KERNEL_OK")
</pallas_src>

<mosaic_0001>
module attributes {stable_mosaic.version = 11 : i64} {
  func.func @_linear_kernel(%arg0: i32, %arg1: i32, %arg2: i32, %arg3: memref<16x128xbf16, #tpu.memory_space<vmem>>, %arg4: memref<128x128xbf16, #tpu.memory_space<vmem>>, %arg5: memref<1x128xf32, #tpu.memory_space<vmem>>, %arg6: memref<16x128xf32, #tpu.memory_space<vmem>>, %arg7: memref<16x128xf32, #tpu.memory_space<vmem>>) attributes {dimension_semantics = [#tpu.dimension_semantics<parallel>, #tpu.dimension_semantics<parallel>, #tpu.dimension_semantics<arbitrary>], iteration_bounds = array<i64: 1, 1, 1>, scalar_prefetch = 0 : i64, scratch_operands = 1 : i64, tpu.core_type = #tpu.core_type<tc>, window_params = [{transform_indices = @transform_0, window_bounds = array<i64: 16, 128>}, {transform_indices = @transform_1, window_bounds = array<i64: 128, 128>}, {transform_indices = @transform_2, window_bounds = array<i64: 1, 128>}, {transform_indices = @transform_3, window_bounds = array<i64: 16, 128>}]} {
    %c0_i32 = arith.constant 0 : i32
    %0 = arith.cmpi eq, %arg2, %c0_i32 : i32
    %1 = arith.extui %0 : i1 to i32
    %c0_i32_0 = arith.constant 0 : i32
    %2 = arith.cmpi ne, %1, %c0_i32_0 : i32
    scf.if %2 {
      %cst_10 = arith.constant 0.000000e+00 : f32
      %12 = vector.broadcast %cst_10 : f32 to vector<16x128xf32>
      %c0_11 = arith.constant 0 : index
      %c0_12 = arith.constant 0 : index
      %13 = vector.load %arg7[%c0_11, %c0_12] : memref<16x128xf32, #tpu.memory_space<vmem>>, vector<16x128xf32>
      tpu.vector_store %arg7[%c0_11, %c0_12], %12 {strides = array<i32>} : memref<16x128xf32, #tpu.memory_space<vmem>>, vector<16x128xf32>,
    } else {
    }
    %c0 = arith.constant 0 : index
    %c0_1 = arith.constant 0 : index
    %3 = vector.load %arg7[%c0, %c0_1] : memref<16x128xf32, #tpu.memory_space<vmem>>, vector<16x128xf32>
    %c0_2 = arith.constant 0 : index
    %c0_3 = arith.constant 0 : index
    %4 = vector.load %arg3[%c0_2, %c0_3] : memref<16x128xbf16, #tpu.memory_space<vmem>>, vector<16x128xbf16>
    %c0_4 = arith.constant 0 : index
    %c0_5 = arith.constant 0 : index
    %5 = vector.load %arg4[%c0_4, %c0_5] : memref<128x128xbf16, #tpu.memory_space<vmem>>, vector<128x128xbf16>
    %cst = arith.constant dense<0.000000e+00> : vector<16x128xf32>
    %6 = tpu.matmul %4, %5, %cst {dimension_numbers = #tpu.dot_dimension_numbers<[1], [0], [0], [1], [0, 0, 1, 1], [], []>} : vector<16x128xbf16>, vector<128x128xbf16>, vector<16x128xf32> -> vector<16x128xf32>
    %7 = arith.addf %3, %6 : vector<16x128xf32>
    %c0_6 = arith.constant 0 : index
    %c0_7 = arith.constant 0 : index
    %8 = vector.load %arg7[%c0_6, %c0_7] : memref<16x128xf32, #tpu.memory_space<vmem>>, vector<16x128xf32>
    tpu.vector_store %arg7[%c0_6, %c0_7], %7 {strides = array<i32>} : memref<16x128xf32, #tpu.memory_space<vmem>>, vector<16x128xf32>,
    %c0_i32_8 = arith.constant 0 : i32
    %9 = arith.cmpi eq, %arg2, %c0_i32_8 : i32
    %10 = arith.extui %9 : i1 to i32
    %c0_i32_9 = arith.constant 0 : i32
    %11 = arith.cmpi ne, %10, %c0_i32_9 : i32
    scf.if %11 {
      %c0_10 = arith.constant 0 : index
      %c0_11 = arith.constant 0 : index
      %12 = vector.load %arg7[%c0_10, %c0_11] : memref<16x128xf32, #tpu.memory_space<vmem>>, vector<16x128xf32>
      %c0_12 = arith.constant 0 : index
      %c0_13 = arith.constant 0 : index
      %13 = vector.load %arg5[%c0_12, %c0_13] : memref<1x128xf32, #tpu.memory_space<vmem>>, vector<1x128xf32>
      %14 = vector.broadcast %13 : vector<1x128xf32> to vector<16x128xf32>
      %15 = arith.addf %12, %14 : vector<16x128xf32>
      %c0_14 = arith.constant 0 : index
      %c0_15 = arith.constant 0 : index
      %16 = vector.load %arg6[%c0_14, %c0_15] : memref<16x128xf32, #tpu.memory_space<vmem>>, vector<16x128xf32>
      tpu.vector_store %arg6[%c0_14, %c0_15], %15 {strides = array<i32>} : memref<16x128xf32, #tpu.memory_space<vmem>>, vector<16x128xf32>,
    } else {
    }
    return
  }
  func.func @transform_0(%arg0: i32, %arg1: i32, %arg2: i32) -> (i32, i32) {
    %c0_i32 = arith.constant 0 : i32
    return %arg0, %arg2 : i32, i32
  }
  func.func @transform_1(%arg0: i32, %arg1: i32, %arg2: i32) -> (i32, i32) {
    %c0_i32 = arith.constant 0 : i32
    return %arg2, %arg1 : i32, i32
  }
  func.func @transform_2(%arg0: i32, %arg1: i32, %arg2: i32) -> (i32, i32) {
    %c0_i32 = arith.constant 0 : i32
    %c0_i32_0 = arith.constant 0 : i32
    return %c0_i32, %arg1 : i32, i32
  }
  func.func @transform_3(%arg0: i32, %arg1: i32, %arg2: i32) -> (i32, i32) {
    %c0_i32 = arith.constant 0 : i32
    return %arg0, %arg1 : i32, i32
  }
}

</mosaic_0001>

<bundles_post_ra>
// kernel: tpu_custom_call.1
= control target key start
LH: loop header
LB: loop body
LE: loop exit
PB: predicated region body
PF: predicated region fallthrough
CT: control target
= control target key end

     0   :  { %8 = vsyncpa [#allocation4], 0  ;;  %s367_s0 = inlined_call_operand.hbm [shape: bf16[16,128], index: 0, kind: input, shape index: {}]   ;;  %s368_s1 = inlined_call_operand.hbm [shape: bf16[128,128], index: 1, kind: input, shape index: {}]   ;;  %s369_s2 = inlined_call_operand.vmem [shape: f32[1,128], index: 2, kind: input, shape index: {}]   ;;  %s370_s3 = inlined_call_operand.hbm [shape: f32[16,128], index: 3, kind: output, shape index: {}]  }
   0x1   :  { %9 = vsyncpa [#allocation7], 0 }
   0x2   :  { %10 = vsyncpa [#allocation5], 0  ;;  %s326_s12 = smov [#allocation3]  }
   0x3   :  { %s16_s13 = sshll.u32 %s326_s12, 4  ;;  %s17_s13 = int_to_ptr.vmem [resolvable:$true] %s16_s13 }
   0x4   :  { %s268_s14 = scalar_lea.vmem %s17_s13, 128  ;;  %p273_p1 = scmp.lt.s32.totalorder %s17_s13, %s17_s13 }
   0x5   :  { %p269_p0 = scmp.ne.s32.totalorder %s17_s13, %s268_s14  ;;  %p274_p2 = scmp.lt.s32.totalorder %s268_s14, %s268_s14 }
   0x7   :  { %p275_p3 = por %p274_p2, %p273_p1 }
   0x9   :  { %p276_p4 = pnand %p275_p3, %p269_p0 }
   0xb   :  { %279 = shalt.err (!%p276_p4)
}
   0xc   :  { %s327_s15 = smov 64   ;;  %s328_s16 = smov 4  }
   0xd   :  { %22 = dma.hbm_to_vmem [thread:$0]  %s367_s0, 128, %s17_s13, [#allocation4], %s327_s15, %s327_s15, %s328_s16  }
   0xe   :  { %s329_s19 = smov [#allocation6]  }
   0xf   :  { %s28_s20 = sshll.u32 %s329_s19, 4  ;;  %s29_s20 = int_to_ptr.vmem [resolvable:$true] %s28_s20 }
  0x10   :  { %s288_s21 = scalar_lea.vmem %s29_s20, 1024  ;;  %p293_p6 = scmp.lt.s32.totalorder %s29_s20, %s29_s20 }
  0x11   :  { %p289_p5 = scmp.ne.s32.totalorder %s29_s20, %s288_s21  ;;  %p294_p7 = scmp.lt.s32.totalorder %s288_s21, %s288_s21 }
  0x13   :  { %p295_p8 = por %p294_p7, %p293_p6 }
  0x15   :  { %p296_p9 = pnand %p295_p8, %p289_p5 }
  0x17   :  { %299 = shalt.err (!%p296_p9)
}
  0x18   :  { %34 = dma.hbm_to_vmem [thread:$0]  %s368_s1, 1024, %s29_s20, [#allocation7], %s327_s15, %s327_s15, %s328_s16  }
  0x19   :  { %320 = dma.done.wait [#allocation4], 128  }
  0x1a   :  { %321 = vsyncadd [#allocation4], 4294967168 }
  0x1b   :  { %322 = dma.done.wait [#allocation7], 1024  }
  0x1c   :  { %323 = vsyncadd [#allocation7], 4294966272  ;;  %v330_v0 = vmov 0.0   ;;  %vm331_vm0 = vmmov 0   ;;  %v251_v1 = vld [vmem:[#allocation6 + $0x38] sm:$0xff]   ;;  %v252_v2 = vld [vmem:[#allocation6 + $0x30] sm:$0xff]  }
  0x1d   :  { %222 = vmatprep.subr.bf16.mxu0 %v330_v0  ;;  %238 = vmatprep.mubr.msk.bf16.mxu0 %vm331_vm0, %v330_v0  ;;  %v253_v3 = vld [vmem:[#allocation6 + $0x28] sm:$0xff]   ;;  %v254_v4 = vld [vmem:[#allocation6 + $0x20] sm:$0xff]   ;;  %v255_v5 = vld [vmem:[#allocation6 + $0x18] sm:$0xff]   ;;  %s332_s24 = smov [#allocation8]  }
  0x1e   :  { %223 = vmatpush3.bf16.msra.mxu0 %v251_v1  ;;  %v256_v6 = vld [vmem:[#allocation6 + $0x10] sm:$0xff]   ;;  %v257_v7 = vld [vmem:[#allocation6 + $0x8] sm:$0xff]   ;;  %v258_v8 = vld [vmem:[#allocation6] sm:$0xff]   ;;  %s190_s25 = sshll.u32 %s332_s24, 4  ;;  %s191_s25 = int_to_ptr.vmem [resolvable:$true] %s190_s25 }
  0x1f   :  { %224 = vmatprep.subr.bf16.mxu0 %v330_v0  ;;  %v259_v9 = vld [vmem:[#allocation3] sm:$0xff]   ;;  %s300_s26 = scalar_lea.vmem %s191_s25, 256  ;;  %p305_p11 = scmp.lt.s32.totalorder %s191_s25, %s191_s25 }
  0x20   :  { %v212_v10 = vld [vmem:[%s369_s2] ss:$0 sm:$0xff]  ;;  %p301_p10 = scmp.ne.s32.totalorder %s191_s25, %s300_s26  ;;  %p306_p12 = scmp.lt.s32.totalorder %s300_s26, %s300_s26 }
  0x22   :  { %225 = vmatpush3.bf16.msra.mxu0 %v252_v2  ;;  %p307_p13 = por %p306_p12, %p305_p11 }
  0x23   :  { %226 = vmatprep.subr.bf16.mxu0 %v330_v0 }
  0x24   :  { %p308_p0 = pnand %p307_p13, %p301_p10 }
  0x26   :  { %227 = vmatpush3.bf16.msra.mxu0 %v253_v3 }
  0x27   :  { %228 = vmatprep.subr.bf16.mxu0 %v330_v0 }
  0x2a   :  { %229 = vmatpush3.bf16.msra.mxu0 %v254_v4 }
  0x2b   :  { %230 = vmatprep.subr.bf16.mxu0 %v330_v0 }
  0x2e   :  { %231 = vmatpush3.bf16.msra.mxu0 %v255_v5 }
  0x2f   :  { %232 = vmatprep.subr.bf16.mxu0 %v330_v0 }
  0x32   :  { %233 = vmatpush3.bf16.msra.mxu0 %v256_v6 }
  0x33   :  { %234 = vmatprep.subr.bf16.mxu0 %v330_v0 }
  0x36   :  { %235 = vmatpush3.bf16.msra.mxu0 %v257_v7 }
  0x37   :  { %236 = vmatprep.subr.bf16.mxu0 %v330_v0 }
  0x3a   :  { %237 = vmatpush3.bf16.msra.mxu0 %v258_v8 }
  0x3d   :  { %239 = vmatmul.mubr.bf16.vlgmr.msra.gmra.mxu0 %v259_v9 }
  0xfd   :  { %v158_v11 = vpop.f32.mrf.mxu0 }
  0xfe   :  { %v181_v12 = vadd.f32 %v212_v10, %v158_v11 }
  0xff   :  { %v240_v13 = vpop.f32.mrf.mxu0 }
 0x100   :  { %183 = vst [vmem:[#allocation8] sm:$0xff] %v181_v12 }
 0x101   :  { %v161_v14 = vpop.f32.mrf.mxu0 }
 0x102   :  { %v182_v15 = vadd.f32 %v212_v10, %v161_v14 }
 0x103   :  { %v241_v16 = vpop.f32.mrf.mxu0 }
 0x104   :  { %184 = vst [vmem:[#allocation8 + $0x8] sm:$0xff] %v182_v15 }
 0x105   :  { %311 = shalt.err (!%p308_p0)
}
 0x106   :  { %s333_s27 = smov 128   ;;  %s334_s2 = smov 8  }
 0x107   :  { %196 = dma.vmem_to_hbm [thread:$0]  %s191_s25, 256, %s370_s3, [#allocation5], %s333_s27, %s333_s27, %s334_s2  }
 0x108   :  { %324 = dma.done.wait [#allocation5], 256  }
 0x109   :  { %325 = vsyncadd [#allocation5], 4294967040 }
 0x10a   :  { %200 = vsyncpa [#allocation4], 1 }
 0x10b   :  { %201 = vsyncpa [#allocation7], 1 }
 0x10c   :  { %202 = vsyncpa [#allocation5], 1 }

</bundles_post_ra>
